<compile_context>
chip_gen: v6e
topology: v6e:2x2x1
jax: 0.10.0
libtpu: 0.0.40
codegen_flags: <defaults>
</compile_context>

<pallas_src>
import jax
import jax.numpy as jnp
from jax.experimental import pallas as pl
from jax.experimental.pallas import tpu as pltpu


def coordxy_kernel(a_ref, b_ref, xs_ref, ys_ref, x_ref, o_ref):
    # a_ref / b_ref : (RB, 1)  per-row (per n,c) channel parameters, f32
    # xs_ref/ys_ref : (1, HW)  flattened coordinate rows, f32 (VMEM-resident)
    # x_ref / o_ref : (RB, HW) activation block
    bias = a_ref[...] * xs_ref[...] + b_ref[...] * ys_ref[...]  # (RB, HW) f32
    o_ref[...] = x_ref[...] + bias.astype(o_ref.dtype)


def coordxy(x, alpha, beta):
    """x: (N, C, H, W); alpha, beta: anything reshapeable to (C,)."""
    N, C, H, W = x.shape
    rows, hw = N * C, H * W

    alpha = jnp.asarray(alpha, jnp.float32).reshape(C)
    beta = jnp.asarray(beta, jnp.float32).reshape(C)

    # One scalar per flattened row r = n*C + c  ->  alpha[c], beta[c].
    a_rows = jnp.broadcast_to(alpha[None, :], (N, C)).reshape(rows, 1)
    b_rows = jnp.broadcast_to(beta[None, :], (N, C)).reshape(rows, 1)

    # Flattened coordinate rows (1, H*W): xs varies along w, ys along h.
    lin_w = jnp.linspace(-1.0, 1.0, W, dtype=jnp.float32)
    lin_h = jnp.linspace(-1.0, 1.0, H, dtype=jnp.float32)
    xs_row = jnp.broadcast_to(lin_w[None, None, :], (1, H, W)).reshape(1, hw)
    ys_row = jnp.broadcast_to(lin_h[None, :, None], (1, H, W)).reshape(1, hw)

    x2 = x.reshape(rows, hw)

    # Row-block size: ~2 MiB of x per block, multiple of 8 sublanes, and keep
    # at least 2 grid steps when possible (v7x has 2 TensorCores).
    itemsize = jnp.dtype(x.dtype).itemsize
    bytes_per_row = max(hw * itemsize, 1)
    if rows <= 8:
        rb = rows
    else:
        target_rows = max(8, ((2 * 1024 * 1024) // bytes_per_row) // 8 * 8)
        half_rows = max(8, (((rows + 1) // 2) + 7) // 8 * 8)
        rb = min(target_rows, half_rows)

    grid = (pl.cdiv(rows, rb),)

    out2 = pl.pallas_call(
        coordxy_kernel,
        out_shape=jax.ShapeDtypeStruct((rows, hw), x.dtype),
        grid=grid,
        in_specs=[
            pl.BlockSpec((rb, 1), lambda i: (i, 0)),    # alpha per row
            pl.BlockSpec((rb, 1), lambda i: (i, 0)),    # beta per row
            pl.BlockSpec((1, hw), lambda i: (0, 0)),    # xs row (resident)
            pl.BlockSpec((1, hw), lambda i: (0, 0)),    # ys row (resident)
            pl.BlockSpec((rb, hw), lambda i: (i, 0)),   # x block
        ],
        out_specs=pl.BlockSpec((rb, hw), lambda i: (i, 0)),
        compiler_params=pltpu.CompilerParams(
            dimension_semantics=("parallel",),
        ),
    )(a_rows, b_rows, xs_row, ys_row, x2)

    return out2.reshape(N, C, H, W)


def coordxy_ref(x, alpha, beta):
    N, C, H, W = x.shape
    xs = jnp.linspace(-1.0, 1.0, W, dtype=jnp.float32).reshape(1, 1, 1, W)
    ys = jnp.linspace(-1.0, 1.0, H, dtype=jnp.float32).reshape(1, 1, H, 1)
    a = jnp.asarray(alpha, jnp.float32).reshape(1, C, 1, 1)
    b = jnp.asarray(beta, jnp.float32).reshape(1, C, 1, 1)
    return (x + a * xs + b * ys).astype(x.dtype)


if __name__ == "__main__":
    key = jax.random.PRNGKey(0)
    k_x, k_a, k_b, k_x2, k_a2, k_b2 = jax.random.split(key, 6)

    # Shapes implied by the module: NCHW, small demo size.
    N, C, H, W = 2, 4, 16, 16
    std = 0.1
    x = jax.random.normal(k_x, (N, C, H, W), dtype=jnp.float32)
    # Parameters: torch.randn(out_channels) * std -> deterministic synthetic init
    alpha = jax.random.normal(k_a, (C,), dtype=jnp.float32) * std
    beta = jax.random.normal(k_b, (C,), dtype=jnp.float32) * std

    out = jax.block_until_ready(coordxy(x, alpha, beta))
    ref = coordxy_ref(x, alpha, beta)
    assert out.shape == x.shape and out.dtype == x.dtype
    assert jnp.allclose(out, ref, atol=1e-5, rtol=1e-5)

    # Second case: non-divisible row count (partial last block) and a lane dim
    # that is not a multiple of 128 — exercises the coarsened, lane-dense path
    # and the per-row alpha/beta indexing across the batch boundary.
    N2, C2, H2, W2 = 3, 7, 20, 24
    x_b = jax.random.normal(k_x2, (N2, C2, H2, W2), dtype=jnp.float32)
    alpha_b = jax.random.normal(k_a2, (C2,), dtype=jnp.float32) * std
    beta_b = jax.random.normal(k_b2, (C2,), dtype=jnp.float32) * std
    out_b = jax.block_until_ready(coordxy(x_b, alpha_b, beta_b))
    ref_b = coordxy_ref(x_b, alpha_b, beta_b)
    assert jnp.allclose(out_b, ref_b, atol=1e-5, rtol=1e-5)

    print("KERNEL_OK")
</pallas_src>

<mosaic_0001>
module attributes {stable_mosaic.version = 11 : i64} {
  func.func @coordxy_kernel(%arg0: i32, %arg1: memref<8x1xf32, #tpu.memory_space<vmem>>, %arg2: memref<8x1xf32, #tpu.memory_space<vmem>>, %arg3: memref<1x256xf32, #tpu.memory_space<vmem>>, %arg4: memref<1x256xf32, #tpu.memory_space<vmem>>, %arg5: memref<8x256xf32, #tpu.memory_space<vmem>>, %arg6: memref<8x256xf32, #tpu.memory_space<vmem>>) attributes {dimension_semantics = [#tpu.dimension_semantics<parallel>], iteration_bounds = array<i64: 1>, scalar_prefetch = 0 : i64, scratch_operands = 0 : i64, tpu.core_type = #tpu.core_type<tc>, window_params = [{transform_indices = @transform_0, window_bounds = array<i64: 8, 1>}, {transform_indices = @transform_1, window_bounds = array<i64: 8, 1>}, {pipeline_mode = #tpu.pipeline_mode<synchronous>, transform_indices = @transform_2, window_bounds = array<i64: 1, 256>}, {pipeline_mode = #tpu.pipeline_mode<synchronous>, transform_indices = @transform_3, window_bounds = array<i64: 1, 256>}, {transform_indices = @transform_4, window_bounds = array<i64: 8, 256>}, {transform_indices = @transform_5, window_bounds = array<i64: 8, 256>}]} {
    %c0 = arith.constant 0 : index
    %c0_0 = arith.constant 0 : index
    %0 = vector.load %arg1[%c0, %c0_0] : memref<8x1xf32, #tpu.memory_space<vmem>>, vector<8x1xf32>
    %c0_1 = arith.constant 0 : index
    %c0_2 = arith.constant 0 : index
    %1 = vector.load %arg3[%c0_1, %c0_2] : memref<1x256xf32, #tpu.memory_space<vmem>>, vector<1x256xf32>
    %2 = vector.broadcast %0 : vector<8x1xf32> to vector<8x256xf32>
    %3 = vector.broadcast %1 : vector<1x256xf32> to vector<8x256xf32>
    %4 = arith.mulf %2, %3 : vector<8x256xf32>
    %c0_3 = arith.constant 0 : index
    %c0_4 = arith.constant 0 : index
    %5 = vector.load %arg2[%c0_3, %c0_4] : memref<8x1xf32, #tpu.memory_space<vmem>>, vector<8x1xf32>
    %c0_5 = arith.constant 0 : index
    %c0_6 = arith.constant 0 : index
    %6 = vector.load %arg4[%c0_5, %c0_6] : memref<1x256xf32, #tpu.memory_space<vmem>>, vector<1x256xf32>
    %7 = vector.broadcast %5 : vector<8x1xf32> to vector<8x256xf32>
    %8 = vector.broadcast %6 : vector<1x256xf32> to vector<8x256xf32>
    %9 = arith.mulf %7, %8 : vector<8x256xf32>
    %10 = arith.addf %4, %9 : vector<8x256xf32>
    %c0_7 = arith.constant 0 : index
    %c0_8 = arith.constant 0 : index
    %11 = vector.load %arg5[%c0_7, %c0_8] : memref<8x256xf32, #tpu.memory_space<vmem>>, vector<8x256xf32>
    %12 = arith.addf %11, %10 : vector<8x256xf32>
    %c0_9 = arith.constant 0 : index
    %c0_10 = arith.constant 0 : index
    %13 = vector.load %arg6[%c0_9, %c0_10] : memref<8x256xf32, #tpu.memory_space<vmem>>, vector<8x256xf32>
    tpu.vector_store %arg6[%c0_9, %c0_10], %12 {strides = array<i32>} : memref<8x256xf32, #tpu.memory_space<vmem>>, vector<8x256xf32>,
    return
  }
  func.func @transform_0(%arg0: i32) -> (i32, i32) {
    %c0_i32 = arith.constant 0 : i32
    %c0_i32_0 = arith.constant 0 : i32
    return %arg0, %c0_i32 : i32, i32
  }
  func.func @transform_1(%arg0: i32) -> (i32, i32) {
    %c0_i32 = arith.constant 0 : i32
    %c0_i32_0 = arith.constant 0 : i32
    return %arg0, %c0_i32 : i32, i32
  }
  func.func @transform_2(%arg0: i32) -> (i32, i32) {
    %c0_i32 = arith.constant 0 : i32
    %c0_i32_0 = arith.constant 0 : i32
    %c0_i32_1 = arith.constant 0 : i32
    return %c0_i32, %c0_i32_0 : i32, i32
  }
  func.func @transform_3(%arg0: i32) -> (i32, i32) {
    %c0_i32 = arith.constant 0 : i32
    %c0_i32_0 = arith.constant 0 : i32
    %c0_i32_1 = arith.constant 0 : i32
    return %c0_i32, %c0_i32_0 : i32, i32
  }
  func.func @transform_4(%arg0: i32) -> (i32, i32) {
    %c0_i32 = arith.constant 0 : i32
    %c0_i32_0 = arith.constant 0 : i32
    return %arg0, %c0_i32 : i32, i32
  }
  func.func @transform_5(%arg0: i32) -> (i32, i32) {
    %c0_i32 = arith.constant 0 : i32
    %c0_i32_0 = arith.constant 0 : i32
    return %arg0, %c0_i32 : i32, i32
  }
}

</mosaic_0001>

<bundles_post_ra>
// kernel: tpu_custom_call.1
= control target key start
LH: loop header
LB: loop body
LE: loop exit
PB: predicated region body
PF: predicated region fallthrough
CT: control target
= control target key end

     0   :  { %v108_v1 = vmov 0   ;;  %s161_s0 = inlined_call_operand.vmem [shape: f32[8,1], index: 0, kind: input, shape index: {}]   ;;  %s162_s1 = inlined_call_operand.vmem [shape: f32[8,1], index: 1, kind: input, shape index: {}]   ;;  %s163_s2 = inlined_call_operand.vmem [shape: f32[1,256], index: 2, kind: input, shape index: {}]   ;;  %s164_s3 = inlined_call_operand.vmem [shape: f32[1,256], index: 3, kind: input, shape index: {}]   ;;  %s165_s4 = inlined_call_operand.vmem [shape: f32[8,256], index: 4, kind: input, shape index: {}]   ;;  %s166_s5 = inlined_call_operand.hbm [shape: f32[8,256], index: 5, kind: output, shape index: {}]  }
   0x1   :  { %v21_v0 = vld [vmem:[%s161_s0] sm:$0xff]  ;;  %85 = vset.pattern.permute.xlu0 %v108_v1 }
   0x2   :  { %10 = vsyncpa [#allocation3], 0  ;;  %25 = vperm.xlu0 %85, %v21_v0   ;;  %v41_v2 = vld [vmem:[%s162_s1] sm:$0xff]  ;;  %v29_v3 = vlaneseq  ;;  %v64_v20 = vld [vmem:[%s165_s4 + $0x8] sm:$0xff]  ;;  %s109_s27 = smov [#allocation2]  }
   0x3   :  { %v22_v7 = vld [vmem:[%s163_s2] sm:$0x3] }
   0x4   :  { %v30_v4 = vshrl.u32 %v29_v3, 7  ;;  %v42_v8 = vld [vmem:[%s164_s3] sm:$0x3]  ;;  %s75_s3 = sshll.u32 %s109_s27, 4  ;;  %s76_s3 = int_to_ptr.vmem [resolvable:$true] %s75_s3 }
   0x5   :  { %v63_v19 = vld [vmem:[%s165_s4] sm:$0xff]  ;;  %s86_s28 = scalar_lea.vmem %s76_s3, 256  ;;  %p91_p1 = scmp.lt.s32.totalorder %s76_s3, %s76_s3 }
   0x6   :  { %45 = vperm.xlu0 %85, %v41_v2   ;;  %v31_v5 = vsub.s32 0, %v30_v4  ;;  %v35_v6 = vsub.s32 1, %v30_v4  ;;  %p87_p0 = scmp.ne.s32.totalorder %s76_s3, %s86_s28  ;;  %p92_p2 = scmp.lt.s32.totalorder %s86_s28, %s86_s28 }
   0x8   :  { %v32_v10 = vrot.slane %v22_v7, %v31_v5  ;;  %v36_v11 = vrot.slane %v22_v7, %v35_v6  ;;  %v52_v12 = vrot.slane %v42_v8, %v31_v5  ;;  %v56_v13 = vrot.slane %v42_v8, %v35_v6  ;;  %p93_p3 = por %p92_p2, %p91_p1 }
   0xa   :  { %p94_p4 = pnand %p93_p3, %p87_p0 }
  0x7d   :  { %v26_v9 = vpop.permute.xlu0 %25 }
  0x7e   :  { %v39_v15 = vmul.f32 %v32_v10, %v26_v9  ;;  %v40_v16 = vmul.f32 %v36_v11, %v26_v9 }
  0x81   :  { %v46_v14 = vpop.permute.xlu0 %45 }
  0x82   :  { %v59_v17 = vmul.f32 %v52_v12, %v46_v14  ;;  %v60_v18 = vmul.f32 %v56_v13, %v46_v14 }
  0x84   :  { %v61_v21 = vadd.f32 %v59_v17, %v39_v15  ;;  %v62_v22 = vadd.f32 %v60_v18, %v40_v16 }
  0x86   :  { %v65_v23 = vadd.f32 %v63_v19, %v61_v21  ;;  %v66_v24 = vadd.f32 %v64_v20, %v62_v22 }
  0x88   :  { %67 = vst [vmem:[#allocation2] sm:$0xff] %v65_v23  ;;  %68 = vst [vmem:[#allocation2 + $0x8] sm:$0xff] %v66_v24 }
  0x89   :  { %97 = shalt.err (!%p94_p4)
}
  0x8a   :  { %78 = dma.vmem_to_hbm [thread:$0]  %s76_s3, 256, %s166_s5, [#allocation3]  }
  0x8b   :  { %106 = dma.done.wait [#allocation3], 256  }
  0x8c   :  { %107 = vsyncadd [#allocation3], 4294967040 }
  0x8d   :  { %82 = vsyncpa [#allocation3], 1 }

</bundles_post_ra>
